<compile_context>
chip_gen: v6e
topology: v6e:2x2x1
jax: 0.10.0
libtpu: 0.0.40
codegen_flags: <defaults>
</compile_context>

<pallas_src>
import jax
import jax.numpy as jnp
import numpy as np
from jax.experimental import pallas as pl
from jax.experimental.pallas import tpu as pltpu

# ---------------- configuration (matches MLP.__init__ with sde != 'cld') -----
DATA_DIM = 2                      # config.data_dim
INDEX_DIM = 1
HIDDEN = 128
IN_DIM = DATA_DIM + INDEX_DIM     # x_input=True, v_input=False  -> 3
OUT_DIM = DATA_DIM                # -> 2

LANE = 128
OUT_PAD = LANE                    # pad fan_out 2 -> 128 (lane-dense stores)
TB_MAX = 256                      # batch tile for large B


def _silu(x):
    # sigmoid = 1 / (1 + exp(-x)); exp and approx reciprocal both run on the
    # EUP, leaving VALU slots free for the bias adds / casts.
    return x * pl.reciprocal(1.0 + jnp.exp(-x), approx=True)


def mlp_kernel(u_ref, t_ref,
               w1_ref, b1_ref,
               w2_ref, b2_ref,
               w3_ref, b3_ref,
               w4_ref, b4_ref,
               w5_ref, b5_ref,
               o_ref):
    # ---- layer 1: fan_in is only 3, so fold the input features in with VPU
    # broadcast-MACs instead of feeding a mostly-zero padded tile to the MXU.
    u = u_ref[...].astype(jnp.float32)             # (TB, DATA_DIM)
    t = t_ref[...].astype(jnp.float32)             # (TB, 1)
    w1 = w1_ref[...]                               # (IN_DIM, HIDDEN) f32

    x = b1_ref[...] + t * w1[DATA_DIM:IN_DIM, :]   # (TB, HIDDEN)
    for j in range(DATA_DIM):                      # static unroll (2 features)
        x = x + u[:, j:j + 1] * w1[j:j + 1, :]
    x = _silu(x)

    # ---- layers 2-4: bf16 MXU matmuls, f32 accumulation, SiLU
    for w_ref, b_ref in ((w2_ref, b2_ref), (w3_ref, b3_ref), (w4_ref, b4_ref)):
        x = _silu(jnp.dot(x.astype(jnp.bfloat16), w_ref[...],
                          preferred_element_type=jnp.float32) + b_ref[...])

    # ---- layer 5: final linear (no activation), fan_out padded to 128 lanes
    x = jnp.dot(x.astype(jnp.bfloat16), w5_ref[...],
                preferred_element_type=jnp.float32) + b5_ref[...]

    o_ref[...] = x.astype(o_ref.dtype)


def _batch_tile(B):
    """Largest useful batch tile; try to keep >=2 grid steps (v7x megacore)."""
    if B >= 2 * TB_MAX:
        return TB_MAX
    half = (B + 1) // 2
    return max(8, ((half + 7) // 8) * 8)   # sublane-aligned


def mlp_forward(u, t, params):
    """u: (B, DATA_DIM) f32, t: (B,) f32. Returns (B, OUT_DIM) f32."""
    B = u.shape[0]
    (w1, b1), (w2, b2), (w3, b3), (w4, b4), (w5, b5) = params

    # Pad last-layer fan_out to a full 128-lane register (zero cols are inert).
    w5p = jnp.pad(w5, ((0, 0), (0, OUT_PAD - OUT_DIM)))        # (H, OUT_PAD)
    b5p = jnp.pad(b5, ((0, 0), (0, OUT_PAD - OUT_DIM)))        # (1, OUT_PAD)

    # bf16 weights for the MXU layers; layer-1 weights and all biases stay f32.
    w2b, w3b, w4b, w5b = (w.astype(jnp.bfloat16) for w in (w2, w3, w4, w5p))

    # Batch tiling: pad B up to a tile multiple instead of asserting.
    tb = _batch_tile(B)
    n_tiles = -(-B // tb)
    Bp = n_tiles * tb
    if Bp != B:
        u = jnp.pad(u, ((0, Bp - B), (0, 0)))
        t = jnp.pad(t, (0, Bp - B))
    t2 = t.reshape(-1, 1)                                       # (Bp, 1)

    wspec = lambda shape: pl.BlockSpec(shape, lambda i: (0, 0))

    out = pl.pallas_call(
        mlp_kernel,
        out_shape=jax.ShapeDtypeStruct((Bp, OUT_PAD), jnp.float32),
        grid=(n_tiles,),
        in_specs=[
            pl.BlockSpec((tb, DATA_DIM), lambda i: (i, 0)),     # u tile (raw)
            pl.BlockSpec((tb, 1), lambda i: (i, 0)),            # t tile (raw)
            wspec((IN_DIM, HIDDEN)), wspec((1, HIDDEN)),        # layer 1 (f32)
            wspec((HIDDEN, HIDDEN)), wspec((1, HIDDEN)),        # layer 2
            wspec((HIDDEN, HIDDEN)), wspec((1, HIDDEN)),        # layer 3
            wspec((HIDDEN, HIDDEN)), wspec((1, HIDDEN)),        # layer 4
            wspec((HIDDEN, OUT_PAD)), wspec((1, OUT_PAD)),      # layer 5
        ],
        out_specs=pl.BlockSpec((tb, OUT_PAD), lambda i: (i, 0)),
        compiler_params=pltpu.CompilerParams(
            dimension_semantics=("parallel",)),
    )(u, t2, w1, b1, w2b, b2, w3b, b3, w4b, b4, w5b, b5p)

    return out[:B, :OUT_DIM]


def init_params(key):
    """Mimic PyTorch nn.Linear default init (uniform +-1/sqrt(fan_in)).
    Weights stored as (fan_in, fan_out); biases as (1, fan_out)."""
    dims = [(IN_DIM, HIDDEN), (HIDDEN, HIDDEN), (HIDDEN, HIDDEN),
            (HIDDEN, HIDDEN), (HIDDEN, OUT_DIM)]
    params = []
    for fan_in, fan_out in dims:
        key, kw, kb = jax.random.split(key, 3)
        bound = 1.0 / np.sqrt(fan_in)
        w = jax.random.uniform(kw, (fan_in, fan_out), jnp.float32, -bound, bound)
        b = jax.random.uniform(kb, (1, fan_out), jnp.float32, -bound, bound)
        params.append((w, b))
    return params


def mlp_reference(u, t, params):
    h = jnp.concatenate([u, t.reshape(-1, 1)], axis=1)
    (w1, b1), (w2, b2), (w3, b3), (w4, b4), (w5, b5) = params
    x = jax.nn.silu(h @ w1 + b1)
    x = jax.nn.silu(x @ w2 + b2)
    x = jax.nn.silu(x @ w3 + b3)
    x = jax.nn.silu(x @ w4 + b4)
    return x @ w5 + b5


def _check(B, key):
    ku, kt, kp = jax.random.split(key, 3)
    u = jax.random.normal(ku, (B, DATA_DIM), jnp.float32)
    t = jax.random.uniform(kt, (B,), jnp.float32)
    params = init_params(kp)
    out = jax.block_until_ready(mlp_forward(u, t, params))
    ref = mlp_reference(u, t, params)
    # bf16 weights/activations on the MXU layers -> loosened tolerance.
    np.testing.assert_allclose(np.asarray(out), np.asarray(ref),
                               rtol=2e-2, atol=2e-2)


if __name__ == "__main__":
    key = jax.random.PRNGKey(0)
    k1, k2 = jax.random.split(key)

    _check(64, k1)    # small demo: tb=32, 2 grid steps
    _check(300, k2)   # non-multiple batch: exercises the padding path

    print("KERNEL_OK")
</pallas_src>

<mosaic_0001>
module attributes {stable_mosaic.version = 11 : i64} {
  func.func @mlp_kernel(%arg0: i32, %arg1: memref<32x2xf32, #tpu.memory_space<vmem>>, %arg2: memref<32x1xf32, #tpu.memory_space<vmem>>, %arg3: memref<3x128xf32, #tpu.memory_space<vmem>>, %arg4: memref<1x128xf32, #tpu.memory_space<vmem>>, %arg5: memref<128x128xbf16, #tpu.memory_space<vmem>>, %arg6: memref<1x128xf32, #tpu.memory_space<vmem>>, %arg7: memref<128x128xbf16, #tpu.memory_space<vmem>>, %arg8: memref<1x128xf32, #tpu.memory_space<vmem>>, %arg9: memref<128x128xbf16, #tpu.memory_space<vmem>>, %arg10: memref<1x128xf32, #tpu.memory_space<vmem>>, %arg11: memref<128x128xbf16, #tpu.memory_space<vmem>>, %arg12: memref<1x128xf32, #tpu.memory_space<vmem>>, %arg13: memref<32x128xf32, #tpu.memory_space<vmem>>) attributes {dimension_semantics = [#tpu.dimension_semantics<parallel>], iteration_bounds = array<i64: 2>, scalar_prefetch = 0 : i64, scratch_operands = 0 : i64, tpu.core_type = #tpu.core_type<tc>, window_params = [{transform_indices = @transform_0, window_bounds = array<i64: 32, 2>}, {transform_indices = @transform_1, window_bounds = array<i64: 32, 1>}, {pipeline_mode = #tpu.pipeline_mode<synchronous>, transform_indices = @transform_2, window_bounds = array<i64: 3, 128>}, {pipeline_mode = #tpu.pipeline_mode<synchronous>, transform_indices = @transform_3, window_bounds = array<i64: 1, 128>}, {pipeline_mode = #tpu.pipeline_mode<synchronous>, transform_indices = @transform_4, window_bounds = array<i64: 128, 128>}, {pipeline_mode = #tpu.pipeline_mode<synchronous>, transform_indices = @transform_5, window_bounds = array<i64: 1, 128>}, {pipeline_mode = #tpu.pipeline_mode<synchronous>, transform_indices = @transform_6, window_bounds = array<i64: 128, 128>}, {pipeline_mode = #tpu.pipeline_mode<synchronous>, transform_indices = @transform_7, window_bounds = array<i64: 1, 128>}, {pipeline_mode = #tpu.pipeline_mode<synchronous>, transform_indices = @transform_8, window_bounds = array<i64: 128, 128>}, {pipeline_mode = #tpu.pipeline_mode<synchronous>, transform_indices = @transform_9, window_bounds = array<i64: 1, 128>}, {pipeline_mode = #tpu.pipeline_mode<synchronous>, transform_indices = @transform_10, window_bounds = array<i64: 128, 128>}, {pipeline_mode = #tpu.pipeline_mode<synchronous>, transform_indices = @transform_11, window_bounds = array<i64: 1, 128>}, {transform_indices = @transform_12, window_bounds = array<i64: 32, 128>}]} {
    %c0 = arith.constant 0 : index
    %c0_0 = arith.constant 0 : index
    %0 = vector.load %arg1[%c0, %c0_0] : memref<32x2xf32, #tpu.memory_space<vmem>>, vector<32x2xf32>
    %c0_1 = arith.constant 0 : index
    %c0_2 = arith.constant 0 : index
    %1 = vector.load %arg2[%c0_1, %c0_2] : memref<32x1xf32, #tpu.memory_space<vmem>>, vector<32x1xf32>
    %c0_3 = arith.constant 0 : index
    %c0_4 = arith.constant 0 : index
    %2 = vector.load %arg3[%c0_3, %c0_4] : memref<3x128xf32, #tpu.memory_space<vmem>>, vector<3x128xf32>
    %c0_5 = arith.constant 0 : index
    %c0_6 = arith.constant 0 : index
    %3 = vector.load %arg4[%c0_5, %c0_6] : memref<1x128xf32, #tpu.memory_space<vmem>>, vector<1x128xf32>
    %4 = vector.extract_strided_slice %2 {offsets = [2, 0], sizes = [1, 128], strides = [1, 1]} : vector<3x128xf32> to vector<1x128xf32>
    %5 = vector.broadcast %1 : vector<32x1xf32> to vector<32x128xf32>
    %6 = vector.broadcast %4 : vector<1x128xf32> to vector<32x128xf32>
    %7 = arith.mulf %5, %6 : vector<32x128xf32>
    %8 = vector.broadcast %3 : vector<1x128xf32> to vector<32x128xf32>
    %9 = arith.addf %8, %7 : vector<32x128xf32>
    %10 = vector.extract_strided_slice %0 {offsets = [0, 0], sizes = [32, 1], strides = [1, 1]} : vector<32x2xf32> to vector<32x1xf32>
    %11 = vector.extract_strided_slice %2 {offsets = [0, 0], sizes = [1, 128], strides = [1, 1]} : vector<3x128xf32> to vector<1x128xf32>
    %12 = vector.broadcast %10 : vector<32x1xf32> to vector<32x128xf32>
    %13 = vector.broadcast %11 : vector<1x128xf32> to vector<32x128xf32>
    %14 = arith.mulf %12, %13 : vector<32x128xf32>
    %15 = arith.addf %9, %14 : vector<32x128xf32>
    %16 = vector.extract_strided_slice %0 {offsets = [0, 1], sizes = [32, 1], strides = [1, 1]} : vector<32x2xf32> to vector<32x1xf32>
    %17 = vector.extract_strided_slice %2 {offsets = [1, 0], sizes = [1, 128], strides = [1, 1]} : vector<3x128xf32> to vector<1x128xf32>
    %18 = vector.broadcast %16 : vector<32x1xf32> to vector<32x128xf32>
    %19 = vector.broadcast %17 : vector<1x128xf32> to vector<32x128xf32>
    %20 = arith.mulf %18, %19 : vector<32x128xf32>
    %21 = arith.addf %15, %20 : vector<32x128xf32>
    %cst = arith.constant 0.000000e+00 : f32
    %22 = vector.broadcast %cst : f32 to vector<32x128xf32>
    %23 = arith.subf %22, %21 : vector<32x128xf32>
    %24 = math.exp %23 : vector<32x128xf32>
    %cst_7 = arith.constant 1.000000e+00 : f32
    %25 = vector.broadcast %cst_7 : f32 to vector<32x128xf32>
    %26 = arith.addf %25, %24 : vector<32x128xf32>
    %27 = tpu.reciprocal %26 {approx = true} : vector<32x128xf32> -> vector<32x128xf32>
    %28 = arith.mulf %21, %27 : vector<32x128xf32>
    %29 = arith.truncf %28 : vector<32x128xf32> to vector<32x128xbf16>
    %c0_8 = arith.constant 0 : index
    %c0_9 = arith.constant 0 : index
    %30 = vector.load %arg5[%c0_8, %c0_9] : memref<128x128xbf16, #tpu.memory_space<vmem>>, vector<128x128xbf16>
    %cst_10 = arith.constant dense<0.000000e+00> : vector<32x128xf32>
    %31 = tpu.matmul %29, %30, %cst_10 {dimension_numbers = #tpu.dot_dimension_numbers<[1], [0], [0], [1], [0, 0, 1, 1], [], []>} : vector<32x128xbf16>, vector<128x128xbf16>, vector<32x128xf32> -> vector<32x128xf32>
    %c0_11 = arith.constant 0 : index
    %c0_12 = arith.constant 0 : index
    %32 = vector.load %arg6[%c0_11, %c0_12] : memref<1x128xf32, #tpu.memory_space<vmem>>, vector<1x128xf32>
    %33 = vector.broadcast %32 : vector<1x128xf32> to vector<32x128xf32>
    %34 = arith.addf %31, %33 : vector<32x128xf32>
    %cst_13 = arith.constant 0.000000e+00 : f32
    %35 = vector.broadcast %cst_13 : f32 to vector<32x128xf32>
    %36 = arith.subf %35, %34 : vector<32x128xf32>
    %37 = math.exp %36 : vector<32x128xf32>
    %cst_14 = arith.constant 1.000000e+00 : f32
    %38 = vector.broadcast %cst_14 : f32 to vector<32x128xf32>
    %39 = arith.addf %38, %37 : vector<32x128xf32>
    %40 = tpu.reciprocal %39 {approx = true} : vector<32x128xf32> -> vector<32x128xf32>
    %41 = arith.mulf %34, %40 : vector<32x128xf32>
    %42 = arith.truncf %41 : vector<32x128xf32> to vector<32x128xbf16>
    %c0_15 = arith.constant 0 : index
    %c0_16 = arith.constant 0 : index
    %43 = vector.load %arg7[%c0_15, %c0_16] : memref<128x128xbf16, #tpu.memory_space<vmem>>, vector<128x128xbf16>
    %cst_17 = arith.constant dense<0.000000e+00> : vector<32x128xf32>
    %44 = tpu.matmul %42, %43, %cst_17 {dimension_numbers = #tpu.dot_dimension_numbers<[1], [0], [0], [1], [0, 0, 1, 1], [], []>} : vector<32x128xbf16>, vector<128x128xbf16>, vector<32x128xf32> -> vector<32x128xf32>
    %c0_18 = arith.constant 0 : index
    %c0_19 = arith.constant 0 : index
    %45 = vector.load %arg8[%c0_18, %c0_19] : memref<1x128xf32, #tpu.memory_space<vmem>>, vector<1x128xf32>
    %46 = vector.broadcast %45 : vector<1x128xf32> to vector<32x128xf32>
    %47 = arith.addf %44, %46 : vector<32x128xf32>
    %cst_20 = arith.constant 0.000000e+00 : f32
    %48 = vector.broadcast %cst_20 : f32 to vector<32x128xf32>
    %49 = arith.subf %48, %47 : vector<32x128xf32>
    %50 = math.exp %49 : vector<32x128xf32>
    %cst_21 = arith.constant 1.000000e+00 : f32
    %51 = vector.broadcast %cst_21 : f32 to vector<32x128xf32>
    %52 = arith.addf %51, %50 : vector<32x128xf32>
    %53 = tpu.reciprocal %52 {approx = true} : vector<32x128xf32> -> vector<32x128xf32>
    %54 = arith.mulf %47, %53 : vector<32x128xf32>
    %55 = arith.truncf %54 : vector<32x128xf32> to vector<32x128xbf16>
    %c0_22 = arith.constant 0 : index
    %c0_23 = arith.constant 0 : index
    %56 = vector.load %arg9[%c0_22, %c0_23] : memref<128x128xbf16, #tpu.memory_space<vmem>>, vector<128x128xbf16>
    %cst_24 = arith.constant dense<0.000000e+00> : vector<32x128xf32>
    %57 = tpu.matmul %55, %56, %cst_24 {dimension_numbers = #tpu.dot_dimension_numbers<[1], [0], [0], [1], [0, 0, 1, 1], [], []>} : vector<32x128xbf16>, vector<128x128xbf16>, vector<32x128xf32> -> vector<32x128xf32>
    %c0_25 = arith.constant 0 : index
    %c0_26 = arith.constant 0 : index
    %58 = vector.load %arg10[%c0_25, %c0_26] : memref<1x128xf32, #tpu.memory_space<vmem>>, vector<1x128xf32>
    %59 = vector.broadcast %58 : vector<1x128xf32> to vector<32x128xf32>
    %60 = arith.addf %57, %59 : vector<32x128xf32>
    %cst_27 = arith.constant 0.000000e+00 : f32
    %61 = vector.broadcast %cst_27 : f32 to vector<32x128xf32>
    %62 = arith.subf %61, %60 : vector<32x128xf32>
    %63 = math.exp %62 : vector<32x128xf32>
    %cst_28 = arith.constant 1.000000e+00 : f32
    %64 = vector.broadcast %cst_28 : f32 to vector<32x128xf32>
    %65 = arith.addf %64, %63 : vector<32x128xf32>
    %66 = tpu.reciprocal %65 {approx = true} : vector<32x128xf32> -> vector<32x128xf32>
    %67 = arith.mulf %60, %66 : vector<32x128xf32>
    %68 = arith.truncf %67 : vector<32x128xf32> to vector<32x128xbf16>
    %c0_29 = arith.constant 0 : index
    %c0_30 = arith.constant 0 : index
    %69 = vector.load %arg11[%c0_29, %c0_30] : memref<128x128xbf16, #tpu.memory_space<vmem>>, vector<128x128xbf16>
    %cst_31 = arith.constant dense<0.000000e+00> : vector<32x128xf32>
    %70 = tpu.matmul %68, %69, %cst_31 {dimension_numbers = #tpu.dot_dimension_numbers<[1], [0], [0], [1], [0, 0, 1, 1], [], []>} : vector<32x128xbf16>, vector<128x128xbf16>, vector<32x128xf32> -> vector<32x128xf32>
    %c0_32 = arith.constant 0 : index
    %c0_33 = arith.constant 0 : index
    %71 = vector.load %arg12[%c0_32, %c0_33] : memref<1x128xf32, #tpu.memory_space<vmem>>, vector<1x128xf32>
    %72 = vector.broadcast %71 : vector<1x128xf32> to vector<32x128xf32>
    %73 = arith.addf %70, %72 : vector<32x128xf32>
    %c0_34 = arith.constant 0 : index
    %c0_35 = arith.constant 0 : index
    %74 = vector.load %arg13[%c0_34, %c0_35] : memref<32x128xf32, #tpu.memory_space<vmem>>, vector<32x128xf32>
    tpu.vector_store %arg13[%c0_34, %c0_35], %73 {strides = array<i32>} : memref<32x128xf32, #tpu.memory_space<vmem>>, vector<32x128xf32>,
    return
  }
  func.func @transform_0(%arg0: i32) -> (i32, i32) {
    %c0_i32 = arith.constant 0 : i32
    %c0_i32_0 = arith.constant 0 : i32
    return %arg0, %c0_i32 : i32, i32
  }
  func.func @transform_1(%arg0: i32) -> (i32, i32) {
    %c0_i32 = arith.constant 0 : i32
    %c0_i32_0 = arith.constant 0 : i32
    return %arg0, %c0_i32 : i32, i32
  }
  func.func @transform_2(%arg0: i32) -> (i32, i32) {
    %c0_i32 = arith.constant 0 : i32
    %c0_i32_0 = arith.constant 0 : i32
    %c0_i32_1 = arith.constant 0 : i32
    return %c0_i32, %c0_i32_0 : i32, i32
  }
  func.func @transform_3(%arg0: i32) -> (i32, i32) {
    %c0_i32 = arith.constant 0 : i32
    %c0_i32_0 = arith.constant 0 : i32
    %c0_i32_1 = arith.constant 0 : i32
    return %c0_i32, %c0_i32_0 : i32, i32
  }
  func.func @transform_4(%arg0: i32) -> (i32, i32) {
    %c0_i32 = arith.constant 0 : i32
    %c0_i32_0 = arith.constant 0 : i32
    %c0_i32_1 = arith.constant 0 : i32
    return %c0_i32, %c0_i32_0 : i32, i32
  }
  func.func @transform_5(%arg0: i32) -> (i32, i32) {
    %c0_i32 = arith.constant 0 : i32
    %c0_i32_0 = arith.constant 0 : i32
    %c0_i32_1 = arith.constant 0 : i32
    return %c0_i32, %c0_i32_0 : i32, i32
  }
  func.func @transform_6(%arg0: i32) -> (i32, i32) {
    %c0_i32 = arith.constant 0 : i32
    %c0_i32_0 = arith.constant 0 : i32
    %c0_i32_1 = arith.constant 0 : i32
    return %c0_i32, %c0_i32_0 : i32, i32
  }
  func.func @transform_7(%arg0: i32) -> (i32, i32) {
    %c0_i32 = arith.constant 0 : i32
    %c0_i32_0 = arith.constant 0 : i32
    %c0_i32_1 = arith.constant 0 : i32
    return %c0_i32, %c0_i32_0 : i32, i32
  }
  func.func @transform_8(%arg0: i32) -> (i32, i32) {
    %c0_i32 = arith.constant 0 : i32
    %c0_i32_0 = arith.constant 0 : i32
    %c0_i32_1 = arith.constant 0 : i32
    return %c0_i32, %c0_i32_0 : i32, i32
  }
  func.func @transform_9(%arg0: i32) -> (i32, i32) {
    %c0_i32 = arith.constant 0 : i32
    %c0_i32_0 = arith.constant 0 : i32
    %c0_i32_1 = arith.constant 0 : i32
    return %c0_i32, %c0_i32_0 : i32, i32
  }
  func.func @transform_10(%arg0: i32) -> (i32, i32) {
    %c0_i32 = arith.constant 0 : i32
    %c0_i32_0 = arith.constant 0 : i32
    %c0_i32_1 = arith.constant 0 : i32
    return %c0_i32, %c0_i32_0 : i32, i32
  }
  func.func @transform_11(%arg0: i32) -> (i32, i32) {
    %c0_i32 = arith.constant 0 : i32
    %c0_i32_0 = arith.constant 0 : i32
    %c0_i32_1 = arith.constant 0 : i32
    return %c0_i32, %c0_i32_0 : i32, i32
  }
  func.func @transform_12(%arg0: i32) -> (i32, i32) {
    %c0_i32 = arith.constant 0 : i32
    %c0_i32_0 = arith.constant 0 : i32
    return %arg0, %c0_i32 : i32, i32
  }
}

</mosaic_0001>

<bundles_post_ra>
// kernel: tpu_custom_call.1
= control target key start
LH: loop header
LB: loop body
LE: loop exit
PB: predicated region body
PF: predicated region fallthrough
CT: control target
= control target key end

     0   :  { %17 = vsyncpa [#allocation3], 0  ;;  %s2023_s0 = inlined_call_operand.vmem [shape: f32[64,2], index: 0, kind: input, shape index: {}]   ;;  %s2024_s1 = inlined_call_operand.vmem [shape: f32[64,1], index: 1, kind: input, shape index: {}]   ;;  %s2025_s2 = inlined_call_operand.vmem [shape: f32[3,128], index: 2, kind: input, shape index: {}]   ;;  %s2026_s3 = inlined_call_operand.vmem [shape: f32[1,128], index: 3, kind: input, shape index: {}]   ;;  %s2027_s4 = inlined_call_operand.vmem [shape: bf16[128,128], index: 4, kind: input, shape index: {}]   ;;  %s2028_s5 = inlined_call_operand.vmem [shape: f32[1,128], index: 5, kind: input, shape index: {}]   ;;  %s2029_s6 = inlined_call_operand.vmem [shape: bf16[128,128], index: 6, kind: input, shape index: {}]   ;;  %s2030_s7 = inlined_call_operand.vmem [shape: f32[1,128], index: 7, kind: input, shape index: {}]   ;;  %s2031_s8 = inlined_call_operand.hbm [shape: bf16[128,128], index: 8, kind: input, shape index: {}]   ;;  %s2032_s9 = inlined_call_operand.vmem [shape: f32[1,128], index: 9, kind: input, shape index: {}]   ;;  %s2033_s10 = inlined_call_operand.hbm [shape: bf16[128,128], index: 10, kind: input, shape index: {}]   ;;  %s2034_s11 = inlined_call_operand.vmem [shape: f32[1,128], index: 11, kind: input, shape index: {}]   ;;  %s2035_s12 = inlined_call_operand.hbm [shape: f32[64,128], index: 12, kind: output, shape index: {}]  }
   0x1   :  { %18 = vsyncpa [#allocation6], 0 }
   0x2   :  { %19 = vsyncpa [#allocation4], 0 }
   0x3   :  { %21 = vsyncpa [#allocation4 + $0x1], 0  ;;  %s1812_s21 = smov 0   ;;  %s1814_s22 = smov 0  }
   0x4   :  { %s1816_s23 = smov 0   ;;  %s1818_s24 = smov 0  }
   0x5 LB: > { %2038 = sst [smem:[#allocation11_spill]] %s1732_s23  ;;  %s1833_s25 = sadd.s32 4294967295, %s1736_s24   ;;  %s1736_s24 = sphi %s1818_s24, %s2053_s24   ;;  %s1732_s23 = sphi %s1816_s23, %s2050_s23   ;;  %s1728_s22 = sphi %s1814_s22, %s2052_s22   ;;  %s1724_s21 = sphi %s1812_s21, %s2051_s21  }
   0x6   : > { %s1274_s26 = sadd.s32 4294967294, %s1736_s24   ;;  %s1837_s27 = sadd.s32 1, %s1736_s24  }
   0x7   : > { %s296_s28 = sadd.s32 1, %s1732_s23  ;;  %s293_s29 = ssub.s32 %s1736_s24, %s1837_s27 }
   0x8   : > { %p306_p0 = scmp.ne.s32.totalorder %s1732_s23, %s1728_s22  ;;  %p294_p1 = scmp.eq.s32.totalorder %s293_s29, 0 }
   0x9   : > { %p307_p2 = scmp.eq.s32.totalorder %s1833_s25, 1  ;;  %p312_p3 = scmp.ne.s32.totalorder %s1728_s22, %s1724_s21 }
   0xa   : > { %p313_p4 = scmp.eq.s32.totalorder %s1274_s26, 1  ;;  %p1275_p7 = scmp.ge.s32.totalorder %s1736_s24, 1 }
   0xb   : > { %s1848_s30 = scalar_select %p294_p1, %s1732_s23, %s296_s28  }
   0xc   : > { %p1850_p5 = por %p307_p2, %p306_p0  ;;  %p1854_p6 = por %p313_p4, %p312_p3 }
   0xd   : > { %2039 = sst [smem:[#allocation12_spill]] %s1848_s30  ;;  %p320_p8 = scmp.lt.s32.totalorder %s1736_s24, 3 }
   0xe   : > { %s2041_s14 = scalar_select %p1854_p6, 1, 0 }
   0xf   : > { %p2036_p9 = scmp.eq.s32.totalorder %s1833_s25, 0  ;;  %p1861_p10 = pnand %p1275_p7, %p320_p8 }
  0x10   : > { %s1738_s16 = smov [#allocation2]   ;;  %s1739_s19 = smov [#allocation5]  }
  0x11   : > { %s350_s17 = sshll.u32 %s1738_s16, 4  ;;  %p1460_p11 = pneg %p1861_p10  ;;  %s351_s17 = int_to_ptr.vmem [resolvable:$true] %s350_s17 }
  0x12   : > { %s366_s20 = sshll.u32 %s1739_s19, 4  ;;  %s1627_s26 = scalar_lea.vmem %s351_s17, 1024  ;;  %s367_s20 = int_to_ptr.vmem [resolvable:$true] %s366_s20 }
  0x13   : > { %p1869_p12 = pnand %p2036_p9, %p1460_p11  ;;  %p1628_p0 = scmp.ne.s32.totalorder %s351_s17, %s1627_s26 }
  0x14   : > { %p1635_p3 = scmp.lt.s32.totalorder %s351_s17, %s351_s17  ;;  %p1636_p4 = scmp.lt.s32.totalorder %s1627_s26, %s1627_s26 }
  0x15   : > { %p1618_p13 = pneg %p1869_p12 }
  0x16   : > { %p1637_p7 = por %p1636_p4, %p1635_p3 }
  0x17   : > { %p1630_p1 = pnand %p1628_p0, %p1618_p13 }
  0x19   : > { %p1631_p2 = pneg %p1630_p1 }
  0x1b   : > { %p1638_p8 = pnand %p1637_p7, %p1631_p2 }
  0x1d   : > { %1641 = shalt.err (!%p1638_p8)
}
  0x1e   : > { %s1740_s28 = smov 64   ;;  %s1741_s29 = smov 4  }
  0x1f   : > { %1463 = dma.hbm_to_vmem [thread:$0]  (!%p1869_p12), %s2031_s8, 1024, %s351_s17, [#allocation3], %s1740_s28, %s1740_s28, %s1741_s29  }
  0x20   : > { %s1653_s30 = scalar_lea.vmem %s367_s20, 1024  ;;  %p1661_p9 = scmp.lt.s32.totalorder %s367_s20, %s367_s20 }
  0x21   : > { %p1654_p11 = scmp.ne.s32.totalorder %s367_s20, %s1653_s30  ;;  %p1662_p6 = scmp.lt.s32.totalorder %s1653_s30, %s1653_s30 }
  0x23   : > { %p1656_p0 = pnand %p1654_p11, %p1618_p13  ;;  %p1663_p3 = por %p1662_p6, %p1661_p9 }
  0x25   : > { %p1657_p1 = pneg %p1656_p0 }
  0x27   : > { %p1664_p2 = pnand %p1663_p3, %p1657_p1 }
  0x29   : > { %1667 = shalt.err (!%p1664_p2)
}
  0x2a   : > { %1466 = dma.hbm_to_vmem [thread:$0]  (!%p1869_p12), %s2033_s10, 1024, %s367_s20, [#allocation6], %s1740_s28, %s1740_s28, %s1741_s29  }
  0x2b   : > { %403 = sbr.rel (%p1861_p10) target bundleno = 1182 (0x49e), region = 68  ;;  %p2044_p4 = scmp.eq.s32.totalorder (!%p1861_p10), %s1833_s25, 0 }
  0x30   : > { %1711 = dma.done.wait (%p2044_p4), [#allocation3], 1024   ;;  %p2045_p13 = pmov %p2044_p4 }
  0x31   : > { %p2046_p7 = pmov %p2044_p4 }
  0x32   : > { %1713 = vsyncadd (%p2045_p13), [#allocation3], 4294966272 }
  0x33   : > { %1715 = dma.done.wait (%p2046_p7), [#allocation6], 1024   ;;  %p2047_p6 = pmov %p2044_p4 }
  0x34   : > { %s1283_s30 = sshll.u32 %s1833_s25, 2  ;;  %v1742_v0 = vmov 0   ;;  %v1743_v9 = vmov 1   ;;  %v1520_v10 = vld [vmem:[%s2027_s4 + $0x38] sm:$0xff]   ;;  %v1521_v11 = vld [vmem:[%s2027_s4 + $0x30] sm:$0xff]   ;;  %v1522_v12 = vld [vmem:[%s2027_s4 + $0x28] sm:$0xff]   ;;  %v498_v18 = vlaneseq }
  0x35   : > { %1717 = vsyncadd (%p2047_p6), [#allocation6], 4294966272  ;;  %1517 = vset.pattern.permute.xlu1 %v1742_v0  ;;  %1516 = vset.pattern.permute.xlu0 %v1742_v0  ;;  %p455_p9 = scmp.lt.s32.totalorder %s1283_s30, 7  ;;  %v1523_v13 = vld [vmem:[%s2027_s4 + $0x20] sm:$0xff]   ;;  %v1524_v14 = vld [vmem:[%s2027_s4 + $0x18] sm:$0xff]   ;;  %s451_s28 = sand.u32 1, %s1728_s22  }
  0x36   : > { %1370 = vmatprep.subr.bf16.mxu0 %v1520_v10  ;;  %v1525_v15 = vld [vmem:[%s2027_s4 + $0x10] sm:$0xff]   ;;  %v1526_v16 = vld [vmem:[%s2027_s4 + $0x8] sm:$0xff]   ;;  %v1527_v17 = vld [vmem:[%s2027_s4] sm:$0xff]   ;;  %v499_v19 = vshrl.u32 %v498_v18, 7  ;;  %s1983_s20 = scalar_lea.sflag [#allocation4], %s451_s28 }
  0x37   : > { %s2055_s30 = smov (!%p455_p9, %s1283_s30), 7  ;;  %1371 = vmatpush3.bf16.msra.mxu0 %v1520_v10  ;;  %v476_v25 = vld [vmem:[%s2025_s2] sm:$0x7] }
  0x38   : > { %s1284_s23 = sshll.u32 %s2055_s30, 3  ;;  %1372 = vmatprep.subr.bf16.mxu0 %v1521_v11  ;;  %v500_v22 = vsub.s32 2, %v499_v19  ;;  %v538_v26 = vsub.s32 0, %v499_v19  ;;  %v566_v31 = vsub.s32 1, %v499_v19  ;;  %v1287_v36 = vld [vmem:[%s2026_s3] ss:$0 sm:$0xff] }
  0x39   : > { %s464_s18 = scalar_lea.vmem %s2024_s1, %s1284_s23  ;;  %s458_s29 = scalar_lea.vmem %s2023_s0, %s1284_s23 }
  0x3a   : > { %v474_v1 = vld [vmem:[%s464_s18 + $0x10] sm:$0xff]  ;;  %v472_v2 = vld [vmem:[%s464_s18] sm:$0xff]  ;;  %v475_v3 = vld [vmem:[%s464_s18 + $0x18] sm:$0xff]  ;;  %v501_v27 = vrot.slane %v476_v25, %v500_v22  ;;  %v539_v30 = vrot.slane %v476_v25, %v538_v26  ;;  %v567_v39 = vrot.slane %v476_v25, %v566_v31  ;;  %s1329_s23 = sshll.u32 %s1833_s25, 9 }
  0x3b   : > { %490 = vperm.xlu1 %1517, %v474_v1   ;;  %480 = vperm.xlu0 %1516, %v472_v2   ;;  %v473_v4 = vld [vmem:[%s464_s18 + $0x8] sm:$0xff]  ;;  %v468_v6 = vld [vmem:[%s458_s29] sm:$0xff]  ;;  %v471_v7 = vld [vmem:[%s458_s29 + $0x18] sm:$0xff]  ;;  %s1981_s18 = scalar_lea.hbm %s2035_s12, %s1329_s23 }
  0x3c   : > { %v469_v5 = vld [vmem:[%s458_s29 + $0x8] sm:$0xff]  ;;  %v470_v8 = vld [vmem:[%s458_s29 + $0x10] sm:$0xff]  ;;  %1373 = vmatpush3.bf16.msra.mxu0 %v1521_v11  ;;  %v1528_v26 = vld [vmem:[%s2029_s6 + $0x38] sm:$0xff]   ;;  %s1282_s29 = sshll.u32 %s451_s28, 5 }
  0x3d   : > { %1374 = vmatprep.subr.bf16.mxu0 %v1522_v12  ;;  %1390 = vmatprep.subr.bf16.mxu1 %v1528_v26  ;;  %v1533_v31 = vld [vmem:[%s2029_s6 + $0x10] sm:$0xff]   ;;  %s453_s26 = scalar_lea.vmem [#allocation7], %s1282_s29  ;;  %s1744_s29 = smov [#allocation7]  }
  0x3e   : > { %1391 = vmatpush3.bf16.msra.mxu1 %v1528_v26  ;;  %s1178_s30 = sshll.u32 %s453_s26, 4  ;;  %s1672_s16 = sshll.u32 %s1744_s29, 4  ;;  %s1976_s30 = int_to_ptr.vmem [resolvable:$true] %s1178_s30  ;;  %s1673_s16 = int_to_ptr.vmem [resolvable:$false] %s1672_s16 }
  0x3f   : > { %495 = vperm.xlu1 %1517, %v475_v3   ;;  %485 = vperm.xlu0 %1516, %v473_v4   ;;  %s1668_s25 = scalar_lea.vmem %s1976_s30, 512  ;;  %s1674_s19 = scalar_lea.vmem %s1673_s16, 1024 }
  0x40   : > { %1375 = vmatpush3.bf16.msra.mxu0 %v1522_v12  ;;  %p1669_p10 = scmp.ne.s32.totalorder %s1976_s30, %s1668_s25  ;;  %p1675_p11 = scmp.lt.s32.totalorder %s1976_s30, %s1673_s16 }
  0x41   : > { %1376 = vmatprep.subr.bf16.mxu0 %v1523_v13  ;;  %p1676_p0 = scmp.lt.s32.totalorder %s1674_s19, %s1668_s25 }
  0x42   : > { %p1670_p12 = pnand %p1669_p10, %p1850_p5 }
  0x43   : > { %523 = vperm.xlu1 %1517, %v469_v5   ;;  %518 = vperm.xlu0 %1516, %v468_v6   ;;  %p1677_p1 = por %p1676_p0, %p1675_p11 }
  0x44   : > { %1377 = vmatpush3.bf16.msra.mxu0 %v1523_v13  ;;  %p1671_p8 = pneg %p1670_p12 }
  0x45   : > { %1378 = vmatprep.subr.bf16.mxu0 %v1524_v14 }
  0x46   : > { %p1678_p3 = pnand %p1677_p1, %p1671_p8 }
  0x47   : > { %533 = vperm.xlu1 %1517, %v471_v7   ;;  %528 = vperm.xlu0 %1516, %v470_v8  }
  0x48   : > { %1379 = vmatpush3.bf16.msra.mxu0 %v1524_v14 }
  0x49   : > { %1380 = vmatprep.subr.bf16.mxu0 %v1525_v15 }
  0x4b   : > { %1519 = vset.pattern.permute.xlu1 %v1743_v9  ;;  %1518 = vset.pattern.permute.xlu0 %v1743_v9 }
  0x4c   : > { %553 = vperm.xlu1 %1519, %v469_v5   ;;  %549 = vperm.xlu0 %1518, %v468_v6  }
  0x4d   : > { %1381 = vmatpush3.bf16.msra.mxu0 %v1525_v15 }
  0x4e   : > { %1382 = vmatprep.subr.bf16.mxu0 %v1526_v16 }
  0x50   : > { %557 = vperm.xlu1 %1519, %v470_v8   ;;  %561 = vperm.xlu0 %1518, %v471_v7  }
  0x51   : > { %1383 = vmatpush3.bf16.msra.mxu0 %v1526_v16 }
  0x52   : > { %1384 = vmatprep.subr.bf16.mxu0 %v1527_v17 }
  0x55   : > { %1385 = vmatpush3.bf16.msra.mxu0 %v1527_v17 }
  0xb6   : > { %v491_v20 = vpop.permute.xlu1 %490  ;;  %v481_v21 = vpop.permute.xlu0 %480 }
  0xb7   : > { %v502_v32 = vmul.f32 %v501_v27, %v481_v21  ;;  %v504_v40 = vmul.f32 %v501_v27, %v491_v20 }
  0xb9   : > { %v512_v42 = vadd.f32 %v1287_v36, %v502_v32  ;;  %v514_v52 = vadd.f32 %v1287_v36, %v504_v40  ;;  %v1534_v32 = vld [vmem:[%s2029_s6 + $0x8] sm:$0xff]  }
  0xba   : > { %v496_v23 = vpop.permute.xlu1 %495  ;;  %v486_v24 = vpop.permute.xlu0 %485 }
  0xbb   : > { %v503_v33 = vmul.f32 %v501_v27, %v486_v24  ;;  %v505_v41 = vmul.f32 %v501_v27, %v496_v23  ;;  %v1529_v27 = vld [vmem:[%s2029_s6 + $0x30] sm:$0xff]  }
  0xbc   : > { %1392 = vmatprep.subr.bf16.mxu1 %v1529_v27 }
  0xbd   : > { %v513_v43 = vadd.f32 %v1287_v36, %v503_v33  ;;  %v515_v53 = vadd.f32 %v1287_v36, %v505_v41  ;;  %1393 = vmatpush3.bf16.msra.mxu1 %v1529_v27  ;;  %v1535_v33 = vld [vmem:[%s2029_s6] sm:$0xff]  }
  0xbe   : > { %v524_v28 = vpop.permute.xlu1 %523  ;;  %v519_v29 = vpop.permute.xlu0 %518 }
  0xbf   : > { %v541_v37 = vmul.f32 %v539_v30, %v524_v28  ;;  %v540_v38 = vmul.f32 %v539_v30, %v519_v29  ;;  %v1530_v28 = vld [vmem:[%s2029_s6 + $0x28] sm:$0xff]   ;;  %v1531_v29 = vld [vmem:[%s2029_s6 + $0x20] sm:$0xff]  }
  0xc0   : > { %1394 = vmatprep.subr.bf16.mxu1 %v1530_v28 }
  0xc1   : > { %v545_v48 = vadd.f32 %v541_v37, %v513_v43  ;;  %v544_v49 = vadd.f32 %v540_v38, %v512_v42  ;;  %1395 = vmatpush3.bf16.msra.mxu1 %v1530_v28 }
  0xc2   : > { %v534_v34 = vpop.permute.xlu1 %533  ;;  %v529_v35 = vpop.permute.xlu0 %528  ;;  %1396 = vmatprep.subr.bf16.mxu1 %v1531_v29 }
  0xc3   : > { %v543_v44 = vmul.f32 %v539_v30, %v534_v34  ;;  %v542_v45 = vmul.f32 %v539_v30, %v529_v35  ;;  %v1532_v30 = vld [vmem:[%s2029_s6 + $0x18] sm:$0xff]   ;;  %v1288_v34 = vld [vmem:[%s2028_s5] ss:$0 sm:$0xff] }
  0xc5   : > { %v547_v56 = vadd.f32 %v543_v44, %v515_v53  ;;  %v546_v57 = vadd.f32 %v542_v45, %v514_v52  ;;  %1397 = vmatpush3.bf16.msra.mxu1 %v1531_v29 }
  0xc6   : > { %1398 = vmatprep.subr.bf16.mxu1 %v1532_v30 }
  0xc7   : > { %v554_v46 = vpop.permute.xlu1 %553  ;;  %v550_v47 = vpop.permute.xlu0 %549 }
  0xc8   : > { %v569_v50 = vmul.f32 %v567_v39, %v554_v46  ;;  %v568_v51 = vmul.f32 %v567_v39, %v550_v47 }
  0xc9   : > { %1399 = vmatpush3.bf16.msra.mxu1 %v1532_v30 }
  0xca   : > { %v573_v54 = vadd.f32 %v569_v50, %v545_v48  ;;  %v572_v55 = vadd.f32 %v568_v51, %v544_v49  ;;  %1400 = vmatprep.subr.bf16.mxu1 %v1533_v31 }
  0xcb   : > { %v558_v58 = vpop.permute.xlu1 %557  ;;  %v562_v59 = vpop.permute.xlu0 %561 }
  0xcc   : > { %v577_v60 = vsub.f32 0.0, %v573_v54  ;;  %v576_v61 = vsub.f32 0.0, %v572_v55  ;;  %v570_v62 = vmul.f32 %v567_v39, %v558_v58  ;;  %v571_v63 = vmul.f32 %v567_v39, %v562_v59 }
  0xcd   : > { %1401 = vmatpush3.bf16.msra.mxu1 %v1533_v31 }
  0xce   : > { %v582_v0 = vmul.f32 1.442695, %v577_v60  ;;  %v580_v1 = vmul.f32 1.442695, %v576_v61  ;;  %v574_v2 = vadd.f32 %v570_v62, %v546_v57  ;;  %v575_v3 = vadd.f32 %v571_v63, %v547_v56  ;;  %1402 = vmatprep.subr.bf16.mxu1 %v1534_v32 }
  0xd0   : > { %1552 = vpow2.f32 %v582_v0  ;;  %v578_v4 = vsub.f32 0.0, %v574_v2  ;;  %v579_v5 = vsub.f32 0.0, %v575_v3 }
  0xd1   : > { %1554 = vpow2.f32 %v580_v1  ;;  %1403 = vmatpush3.bf16.msra.mxu1 %v1534_v32 }
  0xd2   : > { %v584_v6 = vmul.f32 1.442695, %v578_v4  ;;  %v586_v7 = vmul.f32 1.442695, %v579_v5  ;;  %1404 = vmatprep.subr.bf16.mxu1 %v1535_v33  ;;  %v1536_v5 = vld [vmem:[#allocation2 + $0x38] sm:$0xff]  }
  0xd3   : > { %1410 = vmatprep.subr.bf16.mxu0 %v1536_v5 }
  0xd4   : > { %1556 = vpow2.f32 %v584_v6  ;;  %v1537_v6 = vld [vmem:[#allocation2 + $0x30] sm:$0xff]  }
  0xd5   : > { %1558 = vpow2.f32 %v586_v7  ;;  %1405 = vmatpush3.bf16.msra.mxu1 %v1535_v33  ;;  %v1538_v7 = vld [vmem:[#allocation2 + $0x28] sm:$0xff]  }
  0xdd   : > { %v1553_v8 = vpop.eup %1552 }
  0xde   : > { %v1555_v9 = vpop.eup %1554  ;;  %v589_v10 = vadd.f32 1.0, %v1553_v8  ;;  %v1539_v8 = vld [vmem:[#allocation2 + $0x20] sm:$0xff]  }
  0xdf   : > { %v588_v11 = vadd.f32 1.0, %v1555_v9  ;;  %v1540_v9 = vld [vmem:[#allocation2 + $0x18] sm:$0xff]  }
  0xe0   : > { %1560 = vrcp.f32 %v589_v10  ;;  %v1541_v10 = vld [vmem:[#allocation2 + $0x10] sm:$0xff]  }
  0xe1   : > { %v1557_v12 = vpop.eup %1556  ;;  %1562 = vrcp.f32 %v588_v11  ;;  %v1542_v11 = vld [vmem:[#allocation2 + $0x8] sm:$0xff]  }
  0xe2   : > { %v1559_v13 = vpop.eup %1558  ;;  %v590_v14 = vadd.f32 1.0, %v1557_v12  ;;  %v1543_v12 = vld [vmem:[#allocation2] sm:$0xff]  }
  0xe3   : > { %v591_v15 = vadd.f32 1.0, %v1559_v13  ;;  %v1297_v13 = vld [vmem:[%s2030_s7] ss:$0 sm:$0xff] }
  0xe4   : > { %1564 = vrcp.f32 %v590_v14 }
  0xe5   : > { %1566 = vrcp.f32 %v591_v15 }
  0xed   : > { %v1561_v16 = vpop.eup %1560 }
  0xee   : > { %v1563_v17 = vpop.eup %1562  ;;  %v597_v18 = vmul.f32 %v1561_v16, %v573_v54 }
  0xef   : > { %v596_v19 = vmul.f32 %v1563_v17, %v572_v55 }
  0xf1   : > { %v1565_v20 = vpop.eup %1564  ;;  %v600_v21 = vpack.c.bf16 %v597_v18, %v596_v19 }
  0xf2   : > { %v1567_v22 = vpop.eup %1566  ;;  %v598_v23 = vmul.f32 %v1565_v20, %v574_v2 }
  0xf3   : > { %v599_v24 = vmul.f32 %v1567_v22, %v575_v3  ;;  %1386 = vmatprep.mubr.bf16.mxu0 %v600_v21 }
  0xf5   : > { %v601_v25 = vpack.c.bf16 %v599_v24, %v598_v23 }
  0xf7   : > { %1387 = vmatmul.mubr.bf16.vlgmr.msra.gmra.mxu0 %v601_v25 }
  0xf8   : > { %1411 = vmatpush3.bf16.msra.mxu0 %v1536_v5 }
  0xf9   : > { %1412 = vmatprep.subr.bf16.mxu0 %v1537_v6 }
  0xfc   : > { %1413 = vmatpush3.bf16.msra.mxu0 %v1537_v6 }
  0xfd   : > { %1414 = vmatprep.subr.bf16.mxu0 %v1538_v7 }
 0x100   : > { %1415 = vmatpush3.bf16.msra.mxu0 %v1538_v7 }
 0x101   : > { %1416 = vmatprep.subr.bf16.mxu0 %v1539_v8 }
 0x104   : > { %1417 = vmatpush3.bf16.msra.mxu0 %v1539_v8 }
 0x105   : > { %1418 = vmatprep.subr.bf16.mxu0 %v1540_v9 }
 0x108   : > { %1419 = vmatpush3.bf16.msra.mxu0 %v1540_v9 }
 0x109   : > { %1420 = vmatprep.subr.bf16.mxu0 %v1541_v10 }
 0x10c   : > { %1421 = vmatpush3.bf16.msra.mxu0 %v1541_v10 }
 0x10d   : > { %1422 = vmatprep.subr.bf16.mxu0 %v1542_v11 }
 0x110   : > { %1423 = vmatpush3.bf16.msra.mxu0 %v1542_v11 }
 0x111   : > { %1424 = vmatprep.subr.bf16.mxu0 %v1543_v12 }
 0x114   : > { %1425 = vmatpush3.bf16.msra.mxu0 %v1543_v12 }
 0x1b7   : > { %v1388_v35 = vpop.f32.mrf.mxu0 }
 0x1b8   : > { %v716_v36 = vadd.f32 %v1388_v35, %v1288_v34 }
 0x1b9   : > { %v707_v37 = vpop.f32.mrf.mxu0 }
 0x1ba   : > { %v724_v38 = vsub.f32 0.0, %v716_v36  ;;  %v708_v39 = vadd.f32 %v1288_v34, %v707_v37 }
 0x1bb   : > { %v1389_v40 = vpop.f32.mrf.mxu0 }
 0x1bc   : > { %v730_v41 = vmul.f32 1.442695, %v724_v38  ;;  %v722_v42 = vsub.f32 0.0, %v708_v39  ;;  %v719_v43 = vadd.f32 %v1389_v40, %v1288_v34 }
 0x1bd   : > { %v710_v44 = vpop.f32.mrf.mxu0 }
 0x1be   : > { %v726_v45 = vmul.f32 1.442695, %v722_v42  ;;  %v725_v46 = vsub.f32 0.0, %v719_v43  ;;  %v711_v47 = vadd.f32 %v1288_v34, %v710_v44  ;;  %1568 = vpow2.f32 %v730_v41 }
 0x1c0   : > { %1570 = vpow2.f32 %v726_v45  ;;  %v732_v48 = vmul.f32 1.442695, %v725_v46  ;;  %v723_v49 = vsub.f32 0.0, %v711_v47 }
 0x1c2   : > { %1572 = vpow2.f32 %v732_v48  ;;  %v728_v50 = vmul.f32 1.442695, %v723_v49  ;;  %v1544_v48 = vld [vmem:[#allocation5 + $0x38] sm:$0xff]   ;;  %v1545_v49 = vld [vmem:[#allocation5 + $0x30] sm:$0xff]  }
 0x1c3   : > { %1430 = vmatprep.subr.bf16.mxu1 %v1544_v48 }
 0x1c4   : > { %1574 = vpow2.f32 %v728_v50  ;;  %v1546_v50 = vld [vmem:[#allocation5 + $0x28] sm:$0xff]  }
 0x1cb   : > { %v1569_v51 = vpop.eup %1568 }
 0x1cc   : > { %v736_v55 = vadd.f32 1.0, %v1569_v51  ;;  %v1547_v51 = vld [vmem:[#allocation5 + $0x20] sm:$0xff]  }
 0x1cd   : > { %v1571_v52 = vpop.eup %1570 }
 0x1ce   : > { %v734_v53 = vadd.f32 1.0, %v1571_v52  ;;  %v1548_v52 = vld [vmem:[#allocation5 + $0x18] sm:$0xff]  }
 0x1cf   : > { %v1573_v54 = vpop.eup %1572 }
 0x1d0   : > { %v737_v56 = vadd.f32 1.0, %v1573_v54  ;;  %1576 = vrcp.f32 %v734_v53  ;;  %v1549_v53 = vld [vmem:[#allocation5 + $0x10] sm:$0xff]   ;;  %v1550_v54 = vld [vmem:[#allocation5 + $0x8] sm:$0xff]  }
 0x1d1   : > { %v1575_v57 = vpop.eup %1574 }
 0x1d2   : > { %1578 = vrcp.f32 %v737_v56  ;;  %v735_v58 = vadd.f32 1.0, %v1575_v57  ;;  %v1306_v56 = vld [vmem:[%s2032_s9] ss:$0 sm:$0xff] }
 0x1d3   : > { %1580 = vrcp.f32 %v736_v55  ;;  %v1551_v55 = vld [vmem:[#allocation5] sm:$0xff]  }
 0x1d4   : > { %1582 = vrcp.f32 %v735_v58 }
 0x1dd   : > { %v1577_v59 = vpop.eup %1576 }
 0x1de   : > { %v742_v0 = vmul.f32 %v1577_v59, %v708_v39 }
 0x1df   : > { %v1579_v60 = vpop.eup %1578 }
 0x1e0   : > { %v1581_v61 = vpop.eup %1580  ;;  %v745_v63 = vmul.f32 %v1579_v60, %v719_v43 }
 0x1e1   : > { %v1583_v62 = vpop.eup %1582  ;;  %v744_v2 = vmul.f32 %v1581_v61, %v716_v36 }
 0x1e2   : > { %v743_v1 = vmul.f32 %v1583_v62, %v711_v47 }
 0x1e3   : > { %v747_v4 = vpack.c.bf16 %v745_v63, %v744_v2 }
 0x1e4   : > { %v746_v3 = vpack.c.bf16 %v743_v1, %v742_v0 }
 0x1e6   : > { %1406 = vmatprep.mubr.bf16.mxu1 %v746_v3 }
 0x1e7   : > { %1407 = vmatmul.mubr.bf16.vlgmr.msra.gmra.mxu1 %v747_v4 }
 0x1e8   : > { %1431 = vmatpush3.bf16.msra.mxu1 %v1544_v48 }
 0x1e9   : > { %1432 = vmatprep.subr.bf16.mxu1 %v1545_v49 }
 0x1ec   : > { %1433 = vmatpush3.bf16.msra.mxu1 %v1545_v49 }
 0x1ed   : > { %1434 = vmatprep.subr.bf16.mxu1 %v1546_v50 }
 0x1f0   : > { %1435 = vmatpush3.bf16.msra.mxu1 %v1546_v50 }
 0x1f1   : > { %1436 = vmatprep.subr.bf16.mxu1 %v1547_v51 }
 0x1f4   : > { %1437 = vmatpush3.bf16.msra.mxu1 %v1547_v51 }
 0x1f5   : > { %1438 = vmatprep.subr.bf16.mxu1 %v1548_v52 }
 0x1f8   : > { %1439 = vmatpush3.bf16.msra.mxu1 %v1548_v52 }
 0x1f9   : > { %1440 = vmatprep.subr.bf16.mxu1 %v1549_v53 }
 0x1fc   : > { %1441 = vmatpush3.bf16.msra.mxu1 %v1549_v53 }
 0x1fd   : > { %1442 = vmatprep.subr.bf16.mxu1 %v1550_v54 }
 0x200   : > { %1443 = vmatpush3.bf16.msra.mxu1 %v1550_v54 }
 0x201   : > { %1444 = vmatprep.subr.bf16.mxu1 %v1551_v55 }
 0x204   : > { %1445 = vmatpush3.bf16.msra.mxu1 %v1551_v55 }
 0x2a7   : > { %v1408_v14 = vpop.f32.mrf.mxu1 }
 0x2a8   : > { %v862_v15 = vadd.f32 %v1408_v14, %v1297_v13 }
 0x2a9   : > { %v853_v16 = vpop.f32.mrf.mxu1 }
 0x2aa   : > { %v870_v17 = vsub.f32 0.0, %v862_v15  ;;  %v854_v18 = vadd.f32 %v1297_v13, %v853_v16 }
 0x2ab   : > { %v1409_v19 = vpop.f32.mrf.mxu1 }
 0x2ac   : > { %v876_v20 = vmul.f32 1.442695, %v870_v17  ;;  %v868_v21 = vsub.f32 0.0, %v854_v18  ;;  %v865_v22 = vadd.f32 %v1409_v19, %v1297_v13 }
 0x2ad   : > { %v856_v23 = vpop.f32.mrf.mxu1 }
 0x2ae   : > { %v872_v24 = vmul.f32 1.442695, %v868_v21  ;;  %v871_v25 = vsub.f32 0.0, %v865_v22  ;;  %v857_v26 = vadd.f32 %v1297_v13, %v856_v23  ;;  %1584 = vpow2.f32 %v876_v20 }
 0x2b0   : > { %1586 = vpow2.f32 %v872_v24  ;;  %v878_v27 = vmul.f32 1.442695, %v871_v25  ;;  %v869_v28 = vsub.f32 0.0, %v857_v26 }
 0x2b2   : > { %1588 = vpow2.f32 %v878_v27  ;;  %v874_v29 = vmul.f32 1.442695, %v869_v28  ;;  %v1315_v27 = vld [vmem:[%s2034_s11] ss:$0 sm:$0xff] }
 0x2b4   : > { %1590 = vpow2.f32 %v874_v29 }
 0x2bb   : > { %v1585_v30 = vpop.eup %1584 }
 0x2bc   : > { %v882_v34 = vadd.f32 1.0, %v1585_v30 }
 0x2bd   : > { %v1587_v31 = vpop.eup %1586 }
 0x2be   : > { %v880_v32 = vadd.f32 1.0, %v1587_v31 }
 0x2bf   : > { %v1589_v33 = vpop.eup %1588 }
 0x2c0   : > { %v883_v35 = vadd.f32 1.0, %v1589_v33  ;;  %1592 = vrcp.f32 %v880_v32 }
 0x2c1   : > { %v1591_v36 = vpop.eup %1590 }
 0x2c2   : > { %1594 = vrcp.f32 %v883_v35  ;;  %v881_v37 = vadd.f32 1.0, %v1591_v36 }
 0x2c3   : > { %1596 = vrcp.f32 %v882_v34 }
 0x2c4   : > { %1598 = vrcp.f32 %v881_v37 }
 0x2cd   : > { %v1593_v38 = vpop.eup %1592 }
 0x2ce   : > { %v888_v43 = vmul.f32 %v1593_v38, %v854_v18 }
 0x2cf   : > { %v1595_v39 = vpop.eup %1594 }
 0x2d0   : > { %v1597_v40 = vpop.eup %1596  ;;  %v891_v42 = vmul.f32 %v1595_v39, %v865_v22 }
 0x2d1   : > { %v1599_v41 = vpop.eup %1598  ;;  %v890_v45 = vmul.f32 %v1597_v40, %v862_v15 }
 0x2d2   : > { %v889_v44 = vmul.f32 %v1599_v41, %v857_v26 }
 0x2d3   : > { %v893_v47 = vpack.c.bf16 %v891_v42, %v890_v45 }
 0x2d4   : > { %v892_v46 = vpack.c.bf16 %v889_v44, %v888_v43 }
 0x2d6   : > { %1426 = vmatprep.mubr.bf16.mxu0 %v892_v46 }
 0x2d7   : > { %1427 = vmatmul.mubr.bf16.vlgmr.msra.gmra.mxu0 %v893_v47 }
 0x397   : > { %v1428_v57 = vpop.f32.mrf.mxu0 }
 0x398   : > { %v1008_v58 = vadd.f32 %v1428_v57, %v1306_v56 }
 0x399   : > { %v999_v59 = vpop.f32.mrf.mxu0 }
 0x39a   : > { %v1016_v60 = vsub.f32 0.0, %v1008_v58  ;;  %v1000_v61 = vadd.f32 %v1306_v56, %v999_v59 }
 0x39b   : > { %v1429_v62 = vpop.f32.mrf.mxu0 }
 0x39c   : > { %v1022_v63 = vmul.f32 1.442695, %v1016_v60  ;;  %v1014_v0 = vsub.f32 0.0, %v1000_v61  ;;  %v1011_v1 = vadd.f32 %v1429_v62, %v1306_v56 }
 0x39d   : > { %v1002_v2 = vpop.f32.mrf.mxu0 }
 0x39e   : > { %v1018_v3 = vmul.f32 1.442695, %v1014_v0  ;;  %v1017_v4 = vsub.f32 0.0, %v1011_v1  ;;  %v1003_v5 = vadd.f32 %v1306_v56, %v1002_v2  ;;  %1600 = vpow2.f32 %v1022_v63 }
 0x3a0   : > { %1602 = vpow2.f32 %v1018_v3  ;;  %v1024_v6 = vmul.f32 1.442695, %v1017_v4  ;;  %v1015_v7 = vsub.f32 0.0, %v1003_v5 }
 0x3a2   : > { %1604 = vpow2.f32 %v1024_v6  ;;  %v1020_v8 = vmul.f32 1.442695, %v1015_v7 }
 0x3a4   : > { %1606 = vpow2.f32 %v1020_v8 }
 0x3ab   : > { %v1601_v9 = vpop.eup %1600 }
 0x3ac   : > { %v1028_v13 = vadd.f32 1.0, %v1601_v9 }
 0x3ad   : > { %v1603_v10 = vpop.eup %1602 }
 0x3ae   : > { %v1026_v11 = vadd.f32 1.0, %v1603_v10 }
 0x3af   : > { %v1605_v12 = vpop.eup %1604 }
 0x3b0   : > { %v1029_v14 = vadd.f32 1.0, %v1605_v12  ;;  %1608 = vrcp.f32 %v1026_v11 }
 0x3b1   : > { %v1607_v15 = vpop.eup %1606 }
 0x3b2   : > { %1610 = vrcp.f32 %v1029_v14  ;;  %v1027_v16 = vadd.f32 1.0, %v1607_v15 }
 0x3b3   : > { %1612 = vrcp.f32 %v1028_v13 }
 0x3b4   : > { %1614 = vrcp.f32 %v1027_v16 }
 0x3bd   : > { %v1609_v17 = vpop.eup %1608 }
 0x3be   : > { %v1034_v22 = vmul.f32 %v1609_v17, %v1000_v61 }
 0x3bf   : > { %v1611_v18 = vpop.eup %1610 }
 0x3c0   : > { %v1613_v19 = vpop.eup %1612  ;;  %v1037_v21 = vmul.f32 %v1611_v18, %v1011_v1 }
 0x3c1   : > { %v1615_v20 = vpop.eup %1614  ;;  %v1036_v24 = vmul.f32 %v1613_v19, %v1008_v58 }
 0x3c2   : > { %v1035_v23 = vmul.f32 %v1615_v20, %v1003_v5 }
 0x3c3   : > { %v1039_v26 = vpack.c.bf16 %v1037_v21, %v1036_v24 }
 0x3c4   : > { %v1038_v25 = vpack.c.bf16 %v1035_v23, %v1034_v22 }
 0x3c6   : > { %1446 = vmatprep.mubr.bf16.mxu1 %v1038_v25 }
 0x3c7   : > { %1447 = vmatmul.mubr.bf16.vlgmr.msra.gmra.mxu1 %v1039_v26 }
 0x487   : > { %v1448_v28 = vpop.f32.mrf.mxu1 }
 0x488   : > { %v1154_v29 = vadd.f32 %v1448_v28, %v1315_v27 }
 0x489   : > { %v1145_v30 = vpop.f32.mrf.mxu1 }
 0x48a   : > { %1162 = vst [vmem:[%s453_s26 + $0x10] sm:$0xff] %v1154_v29  ;;  %v1146_v31 = vadd.f32 %v1315_v27, %v1145_v30 }
 0x48b   : > { %v1449_v32 = vpop.f32.mrf.mxu1 }
 0x48c   : > { %1160 = vst [vmem:[%s453_s26] sm:$0xff] %v1146_v31  ;;  %v1157_v33 = vadd.f32 %v1449_v32, %v1315_v27 }
 0x48d   : > { %v1148_v34 = vpop.f32.mrf.mxu1 }
 0x48e   : > { %1163 = vst [vmem:[%s453_s26 + $0x18] sm:$0xff] %v1157_v33  ;;  %v1149_v35 = vadd.f32 %v1315_v27, %v1148_v34 }
 0x490   : > { %1161 = vst [vmem:[%s453_s26 + $0x8] sm:$0xff] %v1149_v35 }
 0x491   : > { %1681 = shalt.err (!%p1678_p3)
}
 0x492   : > { %s1682_s28 = scalar_lea.hbm %s1981_s18, 512  ;;  %s1686_s15 = scalar_lea.hbm %s2035_s12, 1024 }
 0x493   : > { %p1683_p2 = scmp.ne.s32.totalorder %s1981_s18, %s1682_s28  ;;  %p1687_p7 = scmp.lt.s32.totalorder %s1981_s18, %s2035_s12 }
 0x494   : > { %p1688_p6 = scmp.lt.s32.totalorder %s1686_s15, %s1682_s28 }
 0x495   : > { %p1684_p4 = pnand %p1683_p2, %p1850_p5 }
 0x496   : > { %p1689_p9 = por %p1688_p6, %p1687_p7 }
 0x497   : > { %p1685_p13 = pneg %p1684_p4 }
 0x499   : > { %p1690_p10 = pnand %p1689_p9, %p1685_p13 }
 0x49b   : > { %1693 = shalt.err (!%p1690_p10)
}
 0x49c   : > { %s1745_s25 = smov 128   ;;  %s1746_s16 = smov 8  }
 0x49d   : > { %1458 = dma.vmem_to_hbm [thread:$0]  (%p1850_p5), %s1976_s30, 512, %s1981_s18, %s1983_s20, %s1745_s25, %s1745_s25, %s1746_s16  }
 0x49e PF: > { %p1475_p12 = scmp.ge.s32.totalorder %s1736_s24, 2  ;;  %s1193_s19 = sand.u32 1, %s1724_s21  }
 0x49f   : > { %p2048_p8 = scmp.ne.s32.totalorder %s2041_s14, 0  ;;  %s1194_s28 = scalar_lea.sflag [#allocation4], %s1193_s19 }
 0x4a1   : > { %p1468_p11 = pnand %p1475_p12, %p2048_p8 }
 0x4a3   : > { %p1469_p0 = pneg %p1468_p11 }
 0x4a5   : > { %1719 = dma.done.wait (%p1469_p0), %s1194_s28, 512  }
 0x4a6   : > { %1721 = vsyncadd (%p1469_p0), %s1194_s28, 4294966784  ;;  %s2049_s26 = sld [smem:[#allocation11_spill]]  ;;  %p24_p1 = scmp.ge.s32.totalorder %s1837_s27, 4  }
 0x4a7   : > { %s2050_s23 = sld [smem:[#allocation12_spill]]  ;;  %s2051_s21 = smov %s1728_s22 }
 0x4a8   : > { %s2053_s24 = smov %s1837_s27  ;;  %26 = sbr.rel (!%p24_p1) target bundleno = 5 (0x5), region = 115 }
 0x4ac   : > { %s2052_s22 = smov %s2049_s26 }
 0x4ad   :  { %1199 = vsyncpa [#allocation3], 1 }
 0x4ae   :  { %1201 = vsyncpa [#allocation3 + $0x1], 1 }
 0x4af   :  { %1202 = vsyncpa [#allocation6], 1 }
 0x4b0   :  { %1203 = vsyncpa [#allocation4], 1 }
 0x4b1   :  { %1205 = vsyncpa [#allocation4 + $0x1], 1 }

</bundles_post_ra>
